<compile_context>
chip_gen: v5e
topology: v5e:2x2
jax: 0.10.0
libtpu: 0.0.40
codegen_flags: <defaults>
</compile_context>

<pallas_src>
import jax
import jax.numpy as jnp
from jax.experimental import pallas as pl
from jax.experimental.pallas import tpu as pltpu


def _round_up(x, m):
    return (x + m - 1) // m * m


def _rgcn_kernel(a_ref, y_ref, b_ref, o_ref):
    r = pl.program_id(1)  # relation (reduction)
    k = pl.program_id(2)  # contraction tile (reduction)

    @pl.when(jnp.logical_and(r == 0, k == 0))
    def _():
        o_ref[...] = jnp.zeros_like(o_ref)

    # acc_tile += A[r, i_tile, k_tile] @ Y[r, k_tile]   (single MXU matmul)
    o_ref[...] += jnp.dot(
        a_ref[...].astype(jnp.float32),
        y_ref[...],
        preferred_element_type=jnp.float32,
    )

    @pl.when(jnp.logical_and(r == pl.num_programs(1) - 1,
                             k == pl.num_programs(2) - 1))
    def _():
        # Fused bias add on the finalize step (bias is zeros when disabled).
        o_ref[...] += b_ref[...]


def rgcn_forward(A, X, W, bias=None, *, tm=256, tk=256):
    """A: (R, N, N), X: (N, F_in), W: (R, F_in, F_out) -> (N, F_out)."""
    R, N, _ = A.shape
    F_out = W.shape[2]

    # --- glue (plain JAX): fold the small X @ W[r] matmuls out of the kernel.
    # Y[r] = X @ W[r]  -> (R, N, F_out); negligible vs the A-side HBM traffic.
    Y = jnp.einsum("ni,rio->rno", X, W, precision=jax.lax.Precision.HIGHEST)

    # Tile / padding geometry ((8, 128)-aligned blocks, lane-dense output).
    tm = min(tm, _round_up(N, 8))
    tk = min(tk, _round_up(N, 128))
    n_m = _round_up(N, tm)          # padded row dim of A / out
    n_k = _round_up(N, tk)          # padded contraction dim
    f_pad = _round_up(F_out, 128)   # lane-dense last dim

    # Pad and narrow A to bf16 (0/1 adjacency exact in bf16 -> half HBM bytes).
    A_p = jnp.pad(A, ((0, 0), (0, n_m - N), (0, n_k - N))).astype(jnp.bfloat16)
    Y_p = jnp.pad(Y, ((0, 0), (0, n_k - N), (0, f_pad - F_out))).astype(jnp.float32)
    if bias is None:
        b_p = jnp.zeros((1, f_pad), jnp.float32)
    else:
        b_p = jnp.pad(bias.astype(jnp.float32), ((0, 0), (0, f_pad - F_out)))

    grid = (n_m // tm, R, n_k // tk)

    out = pl.pallas_call(
        _rgcn_kernel,
        out_shape=jax.ShapeDtypeStruct((n_m, f_pad), jnp.float32),
        grid_spec=pltpu.PrefetchScalarGridSpec(
            num_scalar_prefetch=0,
            grid=grid,
            in_specs=[
                # A[r, i_tile, k_tile] -> kernel sees (tm, tk)
                pl.BlockSpec((pl.Squeezed(), tm, tk), lambda i, r, k: (r, i, k)),
                # Y[r, k_tile, :]      -> kernel sees (tk, f_pad)
                pl.BlockSpec((pl.Squeezed(), tk, f_pad), lambda i, r, k: (r, k, 0)),
                # bias (tiny, resident)
                pl.BlockSpec((1, f_pad), lambda i, r, k: (0, 0)),
            ],
            # Output block index constant across (r, k) -> resident accumulator.
            out_specs=pl.BlockSpec((tm, f_pad), lambda i, r, k: (i, 0)),
        ),
        compiler_params=pltpu.CompilerParams(
            dimension_semantics=("parallel", "arbitrary", "arbitrary"),
        ),
    )(A_p, Y_p, b_p)

    return out[:N, :F_out]


def xavier_uniform(key, shape, dtype=jnp.float32):
    # torch.nn.init.xavier_uniform_ : fan_in/fan_out from the last two dims.
    fan_in, fan_out = shape[-2], shape[-1]
    limit = jnp.sqrt(6.0 / (fan_in + fan_out))
    return jax.random.uniform(key, shape, dtype, minval=-limit, maxval=limit)


class RelationalGraphConvLayerPallas:
    """Deterministic, synthetic-parameter re-implementation of the PyTorch module."""

    def __init__(self, input_size, output_size, num_bases, num_rel, bias=False, seed=0):
        self.input_size = input_size
        self.output_size = output_size
        self.num_bases = num_bases
        self.num_rel = num_rel
        k = jax.random.PRNGKey(seed)
        k1, k2, k3 = jax.random.split(k, 3)
        if num_bases > 0:
            self.w_bases = xavier_uniform(k1, (num_bases, input_size, output_size))
            self.w_rel = xavier_uniform(k2, (num_rel, num_bases))
            self.w = None
        else:
            self.w = xavier_uniform(k1, (num_rel, input_size, output_size))
            self.w_bases = None
            self.w_rel = None
        self.bias = xavier_uniform(k3, (1, output_size)) if bias else None

    def _weights(self):
        if self.num_bases > 0:
            # basis combination (glue, plain JAX)
            return jnp.einsum("rb,bio->rio", self.w_rel, self.w_bases,
                              precision=jax.lax.Precision.HIGHEST)
        return self.w

    def __call__(self, A, X):
        return rgcn_forward(A, X, self._weights(), self.bias)

    def reference(self, A, X):
        """Pure-JAX reference mirroring the PyTorch forward exactly."""
        w = self._weights()
        weights = w.reshape(w.shape[0] * w.shape[1], w.shape[2])
        supports = [jnp.dot(A[i], X, precision=jax.lax.Precision.HIGHEST)
                    for i in range(self.num_rel)]
        tmp = jnp.concatenate(supports, axis=1)
        out = jnp.dot(tmp, weights, precision=jax.lax.Precision.HIGHEST)
        if self.bias is not None:
            out = out + self.bias
        return out


if __name__ == "__main__":
    # Small shapes: num_rel=4, num_bases=3, N=64 nodes, input_size=16, output_size=32.
    num_rel, num_bases = 4, 3
    N, F_in, F_out = 64, 16, 32

    key = jax.random.PRNGKey(0)
    ka, kx = jax.random.split(key)
    # Dense adjacency stack (R, N, N) — stands in for the list of sparse A[i].
    A = (jax.random.uniform(ka, (num_rel, N, N)) < 0.1).astype(jnp.float32)
    X = jax.random.normal(kx, (N, F_in), dtype=jnp.float32)

    for use_bias in (False, True):
        layer = RelationalGraphConvLayerPallas(
            F_in, F_out, num_bases, num_rel, bias=use_bias, seed=0)
        out = jax.block_until_ready(layer(A, X))
        ref = layer.reference(A, X)
        assert out.shape == (N, F_out)
        assert jnp.allclose(out, ref, atol=5e-4, rtol=5e-4), \
            f"Pallas output mismatch vs reference (bias={use_bias})"

    print("KERNEL_OK")
</pallas_src>

<mosaic_0001>
module attributes {stable_mosaic.version = 11 : i64} {
  func.func @_rgcn_kernel(%arg0: i32, %arg1: i32, %arg2: i32, %arg3: memref<1x64x128xbf16, #tpu.memory_space<vmem>>, %arg4: memref<1x128x128xf32, #tpu.memory_space<vmem>>, %arg5: memref<1x128xf32, #tpu.memory_space<vmem>>, %arg6: memref<64x128xf32, #tpu.memory_space<vmem>>) attributes {dimension_semantics = [#tpu.dimension_semantics<parallel>, #tpu.dimension_semantics<arbitrary>, #tpu.dimension_semantics<arbitrary>], iteration_bounds = array<i64: 1, 4, 1>, scalar_prefetch = 0 : i64, scratch_operands = 0 : i64, tpu.core_type = #tpu.core_type<tc>, window_params = [{transform_indices = @transform_0, window_bounds = array<i64: 1, 64, 128>}, {transform_indices = @transform_1, window_bounds = array<i64: 1, 128, 128>}, {pipeline_mode = #tpu.pipeline_mode<synchronous>, transform_indices = @transform_2, window_bounds = array<i64: 1, 128>}, {transform_indices = @transform_3, window_bounds = array<i64: 64, 128>}]} {
    %c0_i32 = arith.constant 0 : i32
    %0 = arith.cmpi eq, %arg1, %c0_i32 : i32
    %c0_i32_0 = arith.constant 0 : i32
    %1 = arith.cmpi eq, %arg2, %c0_i32_0 : i32
    %2 = arith.andi %0, %1 : i1
    %3 = arith.extui %2 : i1 to i32
    %c0_i32_1 = arith.constant 0 : i32
    %4 = arith.cmpi ne, %3, %c0_i32_1 : i32
    scf.if %4 {
      %cst_13 = arith.constant 0.000000e+00 : f32
      %19 = vector.broadcast %cst_13 : f32 to vector<64x128xf32>
      %c0_14 = arith.constant 0 : index
      %c0_15 = arith.constant 0 : index
      %20 = vector.load %arg6[%c0_14, %c0_15] : memref<64x128xf32, #tpu.memory_space<vmem>>, vector<64x128xf32>
      tpu.vector_store %arg6[%c0_14, %c0_15], %19 {strides = array<i32>} : memref<64x128xf32, #tpu.memory_space<vmem>>, vector<64x128xf32>,
    } else {
    }
    %c0 = arith.constant 0 : index
    %c0_2 = arith.constant 0 : index
    %5 = vector.load %arg6[%c0, %c0_2] : memref<64x128xf32, #tpu.memory_space<vmem>>, vector<64x128xf32>
    %c0_3 = arith.constant 0 : index
    %c0_4 = arith.constant 0 : index
    %c0_5 = arith.constant 0 : index
    %6 = vector.load %arg3[%c0_3, %c0_4, %c0_5] : memref<1x64x128xbf16, #tpu.memory_space<vmem>>, vector<1x64x128xbf16>
    %7 = vector.shape_cast %6 : vector<1x64x128xbf16> to vector<64x128xbf16>
    %8 = arith.extf %7 : vector<64x128xbf16> to vector<64x128xf32>
    %c0_6 = arith.constant 0 : index
    %c0_7 = arith.constant 0 : index
    %c0_8 = arith.constant 0 : index
    %9 = vector.load %arg4[%c0_6, %c0_7, %c0_8] : memref<1x128x128xf32, #tpu.memory_space<vmem>>, vector<1x128x128xf32>
    %10 = vector.shape_cast %9 : vector<1x128x128xf32> to vector<128x128xf32>
    %cst = arith.constant dense<0.000000e+00> : vector<64x128xf32>
    %11 = tpu.matmul %8, %10, %cst {dimension_numbers = #tpu.dot_dimension_numbers<[1], [0], [0], [1], [0, 0, 1, 1], [], []>} : vector<64x128xf32>, vector<128x128xf32>, vector<64x128xf32> -> vector<64x128xf32>
    %12 = arith.addf %5, %11 : vector<64x128xf32>
    %c0_9 = arith.constant 0 : index
    %c0_10 = arith.constant 0 : index
    %13 = vector.load %arg6[%c0_9, %c0_10] : memref<64x128xf32, #tpu.memory_space<vmem>>, vector<64x128xf32>
    tpu.vector_store %arg6[%c0_9, %c0_10], %12 {strides = array<i32>} : memref<64x128xf32, #tpu.memory_space<vmem>>, vector<64x128xf32>,
    %c3_i32 = arith.constant 3 : i32
    %14 = arith.cmpi eq, %arg1, %c3_i32 : i32
    %c0_i32_11 = arith.constant 0 : i32
    %15 = arith.cmpi eq, %arg2, %c0_i32_11 : i32
    %16 = arith.andi %14, %15 : i1
    %17 = arith.extui %16 : i1 to i32
    %c0_i32_12 = arith.constant 0 : i32
    %18 = arith.cmpi ne, %17, %c0_i32_12 : i32
    scf.if %18 {
      %c0_13 = arith.constant 0 : index
      %c0_14 = arith.constant 0 : index
      %19 = vector.load %arg6[%c0_13, %c0_14] : memref<64x128xf32, #tpu.memory_space<vmem>>, vector<64x128xf32>
      %c0_15 = arith.constant 0 : index
      %c0_16 = arith.constant 0 : index
      %20 = vector.load %arg5[%c0_15, %c0_16] : memref<1x128xf32, #tpu.memory_space<vmem>>, vector<1x128xf32>
      %21 = vector.broadcast %20 : vector<1x128xf32> to vector<64x128xf32>
      %22 = arith.addf %19, %21 : vector<64x128xf32>
      %c0_17 = arith.constant 0 : index
      %c0_18 = arith.constant 0 : index
      %23 = vector.load %arg6[%c0_17, %c0_18] : memref<64x128xf32, #tpu.memory_space<vmem>>, vector<64x128xf32>
      tpu.vector_store %arg6[%c0_17, %c0_18], %22 {strides = array<i32>} : memref<64x128xf32, #tpu.memory_space<vmem>>, vector<64x128xf32>,
    } else {
    }
    return
  }
  func.func @transform_0(%arg0: i32, %arg1: i32, %arg2: i32) -> (i32, i32, i32) {
    %c0_i32 = arith.constant 0 : i32
    return %arg1, %arg0, %arg2 : i32, i32, i32
  }
  func.func @transform_1(%arg0: i32, %arg1: i32, %arg2: i32) -> (i32, i32, i32) {
    %c0_i32 = arith.constant 0 : i32
    %c0_i32_0 = arith.constant 0 : i32
    return %arg1, %arg2, %c0_i32 : i32, i32, i32
  }
  func.func @transform_2(%arg0: i32, %arg1: i32, %arg2: i32) -> (i32, i32) {
    %c0_i32 = arith.constant 0 : i32
    %c0_i32_0 = arith.constant 0 : i32
    %c0_i32_1 = arith.constant 0 : i32
    return %c0_i32, %c0_i32_0 : i32, i32
  }
  func.func @transform_3(%arg0: i32, %arg1: i32, %arg2: i32) -> (i32, i32) {
    %c0_i32 = arith.constant 0 : i32
    %c0_i32_0 = arith.constant 0 : i32
    return %arg0, %c0_i32 : i32, i32
  }
}

</mosaic_0001>

<bundles_post_ra>
// kernel: tpu_custom_call.1
= control target key start
LH: loop header
LB: loop body
LE: loop exit
PB: predicated region body
PF: predicated region fallthrough
CT: control target
= control target key end

     0   :  { %8 = vsyncpa [#allocation3], 0  ;;  %s994_s0 = inlined_call_operand.hbm [shape: bf16[4,64,128], index: 0, kind: input, shape index: {}]   ;;  %s995_s1 = inlined_call_operand.hbm [shape: f32[4,128,128], index: 1, kind: input, shape index: {}]   ;;  %s996_s2 = inlined_call_operand.vmem [shape: f32[1,128], index: 2, kind: input, shape index: {}]   ;;  %s997_s3 = inlined_call_operand.hbm [shape: f32[64,128], index: 3, kind: output, shape index: {}]  }
   0x1   :  { %10 = vsyncpa [#allocation3 + $0x1], 0 }
   0x2   :  { %11 = vsyncpa [#allocation6], 0 }
   0x3   :  { %13 = vsyncpa [#allocation6 + $0x1], 0 }
   0x4   :  { %14 = vsyncpa [#allocation4], 0  ;;  %s851_s12 = smov 0   ;;  %s853_s13 = smov 0  }
   0x5   :  { %s855_s14 = smov 0   ;;  %s857_s15 = smov 0  }
   0x6   :  { %s859_s16 = smov 0   ;;  %s861_s17 = smov 0  }
   0x7 LB: > { %s511_s18 = sadd.s32 4294967295, %s821_s17   ;;  %s35_s19 = sadd.s32 1, %s817_s16  ;;  %s821_s17 = sphi %s861_s17, %s20_s17   ;;  %s817_s16 = sphi %s859_s16, %s1005_s16   ;;  %s813_s15 = sphi %s857_s15, %s1004_s15   ;;  %s809_s14 = sphi %s855_s14, %s1003_s14   ;;  %s805_s13 = sphi %s853_s13, %s1002_s13   ;;  %s801_s12 = sphi %s851_s12, %s1001_s12  }
   0x8   : > { %p37_p0 = scmp.ge.s32.totalorder %s35_s19, 4  ;;  %s50_s20 = sadd.s32 1, %s809_s14 }
   0x9   : > { %p57_p1 = scmp.ne.s32.totalorder %s809_s14, %s805_s13  ;;  %p58_p2 = scmp.eq.s32.totalorder %s821_s17, 0 }
   0xa   : > { %s1007_s19 = smov (%p37_p0, %s35_s19), 0  ;;  %p63_p4 = scmp.ne.s32.totalorder %s805_s13, %s801_s12 }
   0xb   : > { %p887_p3 = por %p58_p2, %p57_p1  ;;  %s43_s22 = ssub.s32 %s817_s16, %s1007_s19 }
   0xc   : > { %p64_p5 = scmp.eq.s32.totalorder %s511_s18, 0  ;;  %p48_p6 = scmp.eq.s32.totalorder %s43_s22, 0 }
   0xd   : > { %p615_p8 = scmp.lt.s32.totalorder %s821_s17, 4  ;;  %s905_s25 = sand.u32 1, %s809_s14  }
   0xe   : > { %p896_p7 = por %p64_p5, %p63_p4  ;;  %s529_s26 = sshll.u32 %s817_s16, 5 }
   0xf   : > { %s902_s24 = scalar_select %p48_p6, %s809_s14, %s50_s20  }
  0x10   : > { %s514_s27 = sshll.u32 %s905_s25, 5  ;;  %s177_s30 = scalar_lea.hbm %s994_s0, %s529_s26 }
  0x11   : > { %s178_s4 = sshll.u32 %s177_s30, 4  ;;  %s169_s5 = scalar_lea.vmem [#allocation2], %s514_s27  ;;  %s179_s4 = int_to_ptr.hbm [resolvable:$true] %s178_s4 }
  0x12   : > { %s180_s6 = sshll.u32 %s169_s5, 4  ;;  %p914_p9 = pnand %p615_p8, %p887_p3  ;;  %s181_s6 = int_to_ptr.vmem [resolvable:$true] %s180_s6 }
  0x13   : > { %p520_p10 = scmp.ge.s32.totalorder %s821_s17, 1  ;;  %p212_p11 = scmp.lt.s32.totalorder %s821_s17, 5 }
  0x14   : > { %s166_s8 = scalar_lea.sflag [#allocation3], %s905_s25  ;;  %s823_s9 = smov 64  }
  0x15   : > { %s824_s10 = smov 4   ;;  %p213_p12 = pnand %p520_p10, %p212_p11 }
  0x16   : > { %611 = dma.hbm_to_vmem [thread:$0]  (!%p914_p9), %s179_s4, 512, %s181_s6, %s166_s8, %s823_s9, %s823_s9, %s824_s10  }
  0x17   : > { %s517_s11 = sshll.u32 %s905_s25, 7  ;;  %s530_s12 = sshll.u32 %s817_s16, 7 }
  0x18   : > { %s201_s21 = scalar_lea.hbm %s995_s1, %s530_s12  ;;  %s194_s27 = scalar_lea.vmem [#allocation5], %s517_s11 }
  0x19   : > { %s202_s26 = sshll.u32 %s201_s21, 4  ;;  %s204_s28 = sshll.u32 %s194_s27, 4  ;;  %s203_s26 = int_to_ptr.hbm [resolvable:$true] %s202_s26  ;;  %s205_s28 = int_to_ptr.vmem [resolvable:$true] %s204_s28 }
  0x1a   : > { %s191_s29 = scalar_lea.sflag [#allocation6], %s905_s25  ;;  %s825_s30 = smov 128  }
  0x1b   : > { %s826_s5 = smov 8   ;;  %216 = sbr.rel (%p213_p12) target bundleno = 238 (0xee), region = 32 }
  0x1c   : > { %614 = dma.hbm_to_vmem [thread:$0]  (!%p914_p9), %s203_s26, 2048, %s205_s28, %s191_s29, %s825_s30, %s825_s30, %s826_s5  }
  0x1d   : > { %s218_s4 = sand.u32 (!%p213_p12), 1, %s805_s13  }
  0x1e   : > { %s521_s6 = sshll.u32 (!%p213_p12), %s218_s4, 5  ;;  %s219_s8 = scalar_lea.sflag (!%p213_p12), [#allocation3], %s218_s4 }
  0x1f   : > { %s932_s9 = scalar_lea.vmem (!%p213_p12), [#allocation2], %s521_s6 }
  0x20   : > { %788 = dma.done.wait (%p896_p7), %s219_s8, 512  }
  0x21   : > { %790 = vsyncadd (%p896_p7), %s219_s8, 4294966784  ;;  %s522_s10 = sshll.u32 %s218_s4, 7  ;;  %s229_s25 = scalar_lea.sflag [#allocation6], %s218_s4 }
  0x22   : > { %s938_s11 = scalar_lea.vmem [#allocation5], %s522_s10 }
  0x23   : > { %792 = dma.done.wait (%p896_p7), %s229_s25, 2048  }
  0x24   : > { %794 = vsyncadd (%p896_p7), %s229_s25, 4294965248  ;;  %p259_p13 = scmp.eq.s32.totalorder %s813_s15, 0 }
  0x25   : > { %v827_v0 = vmov (%p259_p13), 0.0  }
  0x26   : > { %264 = sbr.rel (!%p259_p13) target bundleno = 46 (0x2e), region = 44  ;;  %265 = vst [vmem:[#allocation7] sm:$0xff] (%p259_p13), %v827_v0 }
  0x27   : > { %266 = vst [vmem:[#allocation7 + $0x8] sm:$0xff] (%p259_p13), %v827_v0 }
  0x28   : > { %267 = vst [vmem:[#allocation7 + $0x10] sm:$0xff] (%p259_p13), %v827_v0 }
  0x29   : > { %268 = vst [vmem:[#allocation7 + $0x18] sm:$0xff] (%p259_p13), %v827_v0 }
  0x2a   : > { %269 = vst [vmem:[#allocation7 + $0x20] sm:$0xff] (%p259_p13), %v827_v0 }
  0x2b   : > { %270 = vst [vmem:[#allocation7 + $0x28] sm:$0xff] %v827_v0 }
  0x2c   : > { %271 = vst [vmem:[#allocation7 + $0x30] sm:$0xff] %v827_v0 }
  0x2d   : > { %272 = vst [vmem:[#allocation7 + $0x38] sm:$0xff] %v827_v0 }
  0x2e PF: > { %v312_v1 = vld [vmem:[%s938_s11 + $0x78] sm:$0xff]  ;;  %v311_v2 = vld [vmem:[%s938_s11 + $0x70] sm:$0xff]  ;;  %v310_v3 = vld [vmem:[%s938_s11 + $0x68] sm:$0xff]  ;;  %p370_p0 = scmp.eq.s32.totalorder %s813_s15, 3 }
  0x2f   : > { %553 = vmatpush.msra.mxu2 %v312_v1  ;;  %554 = vmatpush.msra.mxu3 %v312_v1  ;;  %v309_v4 = vld [vmem:[%s938_s11 + $0x60] sm:$0xff]  ;;  %v308_v5 = vld [vmem:[%s938_s11 + $0x58] sm:$0xff]  ;;  %v307_v6 = vld [vmem:[%s938_s11 + $0x50] sm:$0xff] }
  0x30   : > { %313 = vmatpush.msra.mxu0 %v312_v1  ;;  %552 = vmatpush.msra.mxu1 %v312_v1  ;;  %v306_v7 = vld [vmem:[%s938_s11 + $0x48] sm:$0xff]  ;;  %v305_v8 = vld [vmem:[%s938_s11 + $0x40] sm:$0xff]  ;;  %v304_v9 = vld [vmem:[%s938_s11 + $0x38] sm:$0xff] }
  0x31   : > { %556 = vmatpush.msra.mxu2 %v311_v2  ;;  %557 = vmatpush.msra.mxu3 %v311_v2  ;;  %v303_v10 = vld [vmem:[%s938_s11 + $0x30] sm:$0xff]  ;;  %v302_v11 = vld [vmem:[%s938_s11 + $0x28] sm:$0xff]  ;;  %v301_v12 = vld [vmem:[%s938_s11 + $0x20] sm:$0xff] }
  0x32   : > { %314 = vmatpush.msra.mxu0 %v311_v2  ;;  %555 = vmatpush.msra.mxu1 %v311_v2  ;;  %v300_v13 = vld [vmem:[%s938_s11 + $0x18] sm:$0xff]  ;;  %v299_v14 = vld [vmem:[%s938_s11 + $0x10] sm:$0xff]  ;;  %v298_v17 = vld [vmem:[%s938_s11 + $0x8] sm:$0xff] }
  0x33   : > { %559 = vmatpush.msra.mxu2 %v310_v3  ;;  %560 = vmatpush.msra.mxu3 %v310_v3  ;;  %v550_v15 = vld [vmem:[%s932_s9 + $0x10] sm:$0xff]   ;;  %v551_v16 = vld [vmem:[%s932_s9 + $0x18] sm:$0xff]   ;;  %v534_v18 = vld [vmem:[%s932_s9] sm:$0xff]  }
  0x34   : > { %315 = vmatpush.msra.mxu0 %v310_v3  ;;  %558 = vmatpush.msra.mxu1 %v310_v3  ;;  %v549_v19 = vld [vmem:[%s932_s9 + $0x8] sm:$0xff]   ;;  %v297_v20 = vld [vmem:[%s938_s11] sm:$0xff]  ;;  %v543_v21 = vunpack.c.l.bf16 %v550_v15  ;;  %v547_v22 = vunpack.c.l.bf16 %v551_v16  ;;  %v535_v23 = vunpack.c.l.bf16 %v534_v18  ;;  %v544_v25 = vunpack.c.h.bf16 %v550_v15  ;;  %v275_v30 = vld [vmem:[#allocation7 + $0x10] sm:$0xff] }
  0x35   : > { %562 = vmatpush.msra.mxu2 %v309_v4  ;;  %563 = vmatpush.msra.mxu3 %v309_v4  ;;  %v539_v24 = vunpack.c.l.bf16 %v549_v19  ;;  %v548_v26 = vunpack.c.h.bf16 %v551_v16  ;;  %v536_v27 = vunpack.c.h.bf16 %v534_v18  ;;  %v540_v28 = vunpack.c.h.bf16 %v549_v19  ;;  %v273_v29 = vld [vmem:[#allocation7] sm:$0xff]  ;;  %v279_v36 = vld [vmem:[#allocation7 + $0x30] sm:$0xff]  ;;  %v274_v41 = vld [vmem:[#allocation7 + $0x8] sm:$0xff] }
  0x36   : > { %316 = vmatpush.msra.mxu0 %v309_v4  ;;  %561 = vmatpush.msra.mxu1 %v309_v4  ;;  %v277_v35 = vld [vmem:[#allocation7 + $0x20] sm:$0xff]  ;;  %v276_v42 = vld [vmem:[#allocation7 + $0x18] sm:$0xff]  ;;  %v278_v47 = vld [vmem:[#allocation7 + $0x28] sm:$0xff] }
  0x37   : > { %565 = vmatpush.msra.mxu2 %v308_v5  ;;  %566 = vmatpush.msra.mxu3 %v308_v5  ;;  %v280_v48 = vld [vmem:[#allocation7 + $0x38] sm:$0xff]  ;;  %v674_v54 = vld [vmem:[%s996_s2] ss:$0 sm:$0xff] (%p370_p0) }
  0x38   : > { %317 = vmatpush.msra.mxu0 %v308_v5  ;;  %564 = vmatpush.msra.mxu1 %v308_v5 }
  0x39   : > { %568 = vmatpush.msra.mxu2 %v307_v6  ;;  %569 = vmatpush.msra.mxu3 %v307_v6 }
  0x3a   : > { %318 = vmatpush.msra.mxu0 %v307_v6  ;;  %567 = vmatpush.msra.mxu1 %v307_v6 }
  0x3b   : > { %571 = vmatpush.msra.mxu2 %v306_v7  ;;  %572 = vmatpush.msra.mxu3 %v306_v7 }
  0x3c   : > { %319 = vmatpush.msra.mxu0 %v306_v7  ;;  %570 = vmatpush.msra.mxu1 %v306_v7 }
  0x3d   : > { %574 = vmatpush.msra.mxu2 %v305_v8  ;;  %575 = vmatpush.msra.mxu3 %v305_v8 }
  0x3e   : > { %320 = vmatpush.msra.mxu0 %v305_v8  ;;  %573 = vmatpush.msra.mxu1 %v305_v8 }
  0x3f   : > { %577 = vmatpush.msra.mxu2 %v304_v9  ;;  %578 = vmatpush.msra.mxu3 %v304_v9 }
  0x40   : > { %321 = vmatpush.msra.mxu0 %v304_v9  ;;  %576 = vmatpush.msra.mxu1 %v304_v9 }
  0x41   : > { %580 = vmatpush.msra.mxu2 %v303_v10  ;;  %581 = vmatpush.msra.mxu3 %v303_v10 }
  0x42   : > { %322 = vmatpush.msra.mxu0 %v303_v10  ;;  %579 = vmatpush.msra.mxu1 %v303_v10 }
  0x43   : > { %583 = vmatpush.msra.mxu2 %v302_v11  ;;  %584 = vmatpush.msra.mxu3 %v302_v11 }
  0x44   : > { %323 = vmatpush.msra.mxu0 %v302_v11  ;;  %582 = vmatpush.msra.mxu1 %v302_v11 }
  0x45   : > { %586 = vmatpush.msra.mxu2 %v301_v12  ;;  %587 = vmatpush.msra.mxu3 %v301_v12 }
  0x46   : > { %324 = vmatpush.msra.mxu0 %v301_v12  ;;  %585 = vmatpush.msra.mxu1 %v301_v12 }
  0x47   : > { %589 = vmatpush.msra.mxu2 %v300_v13  ;;  %590 = vmatpush.msra.mxu3 %v300_v13 }
  0x48   : > { %325 = vmatpush.msra.mxu0 %v300_v13  ;;  %588 = vmatpush.msra.mxu1 %v300_v13 }
  0x49   : > { %592 = vmatpush.msra.mxu2 %v299_v14  ;;  %593 = vmatpush.msra.mxu3 %v299_v14 }
  0x4a   : > { %326 = vmatpush.msra.mxu0 %v299_v14  ;;  %591 = vmatpush.msra.mxu1 %v299_v14 }
  0x4b   : > { %595 = vmatpush.msra.mxu2 %v298_v17  ;;  %596 = vmatpush.msra.mxu3 %v298_v17 }
  0x4c   : > { %327 = vmatpush.msra.mxu0 %v298_v17  ;;  %594 = vmatpush.msra.mxu1 %v298_v17 }
  0x4d   : > { %598 = vmatpush.msra.mxu2 %v297_v20  ;;  %599 = vmatpush.msra.mxu3 %v297_v20 }
  0x4e   : > { %341 = vmatmul.f32.vlgmr.msra.gmra.mxu2 %v543_v21  ;;  %347 = vmatmul.f32.vlgmr.msra.gmra.mxu3 %v547_v22 }
  0x4f   : > { %328 = vmatpush.msra.mxu0 %v297_v20  ;;  %597 = vmatpush.msra.mxu1 %v297_v20 }
  0x50   : > { %329 = vmatmul.f32.vlgmr.msra.gmra.mxu0 %v535_v23  ;;  %335 = vmatmul.f32.vlgmr.msra.gmra.mxu1 %v539_v24 }
  0x56   : > { %344 = vmatmul.f32.gmra.mxu2 %v544_v25  ;;  %350 = vmatmul.f32.gmra.mxu3 %v548_v26 }
  0x58   : > { %332 = vmatmul.f32.gmra.mxu0 %v536_v27  ;;  %338 = vmatmul.f32.gmra.mxu1 %v540_v28 }
  0xcd   : > { %v330_v31 = vpop.f32.mrf.mxu0  ;;  %v336_v32 = vpop.f32.mrf.mxu1 }
  0xce   : > { %v354_v33 = vadd.f32 %v330_v31, %v273_v29  ;;  %v356_v34 = vadd.f32 %v336_v32, %v275_v30 }
  0xd0   : > { %362 = vst [vmem:[#allocation7] sm:$0xff] %v354_v33 }
  0xd1   : > { %364 = vst [vmem:[#allocation7 + $0x10] sm:$0xff] %v356_v34  ;;  %v342_v37 = vpop.f32.mrf.mxu2  ;;  %v348_v38 = vpop.f32.mrf.mxu3 }
  0xd2   : > { %v358_v39 = vadd.f32 %v342_v37, %v277_v35  ;;  %v360_v40 = vadd.f32 %v348_v38, %v279_v36 }
  0xd4   : > { %366 = vst [vmem:[#allocation7 + $0x20] sm:$0xff] %v358_v39 }
  0xd5   : > { %368 = vst [vmem:[#allocation7 + $0x30] sm:$0xff] %v360_v40  ;;  %v333_v43 = vpop.f32.mrf.mxu0  ;;  %v339_v44 = vpop.f32.mrf.mxu1 }
  0xd6   : > { %v355_v45 = vadd.f32 %v333_v43, %v274_v41  ;;  %v357_v46 = vadd.f32 %v339_v44, %v276_v42 }
  0xd7   : > { %v375_v53 = vld [vmem:[#allocation7] sm:$0xff] (%p370_p0) }
  0xd8   : > { %363 = vst [vmem:[#allocation7 + $0x8] sm:$0xff] %v355_v45  ;;  %v377_v56 = vld [vmem:[#allocation7 + $0x10] sm:$0xff] (%p370_p0)  ;;  %v387_v58 = vadd.f32 (%p370_p0), %v674_v54, %v375_v53 }
  0xd9   : > { %365 = vst [vmem:[#allocation7 + $0x18] sm:$0xff] %v357_v46  ;;  %v345_v49 = vpop.f32.mrf.mxu2  ;;  %v351_v50 = vpop.f32.mrf.mxu3  ;;  %374 = sbr.rel (!%p370_p0) target bundleno = 232 (0xe8), region = 48  ;;  %v389_v60 = vadd.f32 (%p370_p0), %v674_v54, %v377_v56 }
  0xda   : > { %v359_v51 = vadd.f32 %v345_v49, %v278_v47  ;;  %v361_v52 = vadd.f32 %v351_v50, %v280_v48  ;;  %395 = vst [vmem:[#allocation7] sm:$0xff] (%p370_p0), %v387_v58 }
  0xdb   : > { %v379_v61 = vld [vmem:[#allocation7 + $0x20] sm:$0xff] (%p370_p0)  ;;  %397 = vst [vmem:[#allocation7 + $0x10] sm:$0xff] (%p370_p0), %v389_v60 }
  0xdc   : > { %367 = vst [vmem:[#allocation7 + $0x28] sm:$0xff] %v359_v51  ;;  %v381_v0 = vld [vmem:[#allocation7 + $0x30] sm:$0xff] (%p370_p0)  ;;  %v391_v1 = vadd.f32 (%p370_p0), %v674_v54, %v379_v61 }
  0xdd   : > { %369 = vst [vmem:[#allocation7 + $0x38] sm:$0xff] %v361_v52  ;;  %v393_v4 = vadd.f32 (%p370_p0), %v674_v54, %v381_v0 }
  0xde   : > { %399 = vst [vmem:[#allocation7 + $0x20] sm:$0xff] %v391_v1 }
  0xdf   : > { %v376_v55 = vld [vmem:[#allocation7 + $0x8] sm:$0xff]  ;;  %401 = vst [vmem:[#allocation7 + $0x30] sm:$0xff] %v393_v4 }
  0xe0   : > { %v378_v57 = vld [vmem:[#allocation7 + $0x18] sm:$0xff]  ;;  %v388_v59 = vadd.f32 %v674_v54, %v376_v55 }
  0xe1   : > { %v390_v63 = vadd.f32 %v674_v54, %v378_v57 }
  0xe2   : > { %396 = vst [vmem:[#allocation7 + $0x8] sm:$0xff] %v388_v59 }
  0xe3   : > { %v380_v62 = vld [vmem:[#allocation7 + $0x28] sm:$0xff]  ;;  %398 = vst [vmem:[#allocation7 + $0x18] sm:$0xff] %v390_v63 }
  0xe4   : > { %v382_v2 = vld [vmem:[#allocation7 + $0x38] sm:$0xff]  ;;  %v392_v3 = vadd.f32 %v674_v54, %v380_v62 }
  0xe5   : > { %v394_v5 = vadd.f32 %v674_v54, %v382_v2 }
  0xe6   : > { %400 = vst [vmem:[#allocation7 + $0x28] sm:$0xff] %v392_v3 }
  0xe7   : > { %402 = vst [vmem:[#allocation7 + $0x38] sm:$0xff] %v394_v5 }
  0xe8 PF: > { %p616_p1 = scmp.eq.s32.totalorder %s511_s18, 3  ;;  %s413_s20 = sshll.u32 %s997_s3, 4  ;;  %s414_s20 = int_to_ptr.hbm [resolvable:$true] %s413_s20 }
  0xe9   : > { %s828_s22 = smov [#allocation7]   ;;  %s829_s26 = smov 128  }
  0xea   : > { %s411_s21 = sshll.u32 %s828_s22, 4  ;;  %s830_s27 = smov 8   ;;  %s412_s21 = int_to_ptr.vmem [resolvable:$true] %s411_s21 }
  0xeb   : > { %605 = dma.vmem_to_hbm [thread:$0]  (%p616_p1), %s412_s21, 1024, %s414_s20, [#allocation4], %s829_s26, %s829_s26, %s830_s27  }
  0xec   : > { %796 = dma.done.wait (%p616_p1), [#allocation4], 1024  }
  0xed   : > { %798 = vsyncadd (%p616_p1), [#allocation4], 4294966272 }
  0xee PF: > { %s20_s17 = sadd.s32 1, %s821_s17   ;;  %s1001_s12 = smov %s805_s13 }
  0xef   : > { %p17_p2 = scmp.ge.s32.totalorder %s20_s17, 6   ;;  %s1002_s13 = smov %s809_s14 }
  0xf0   : > { %s1003_s14 = smov %s902_s24  ;;  %s1004_s15 = smov %s817_s16 }
  0xf1   : > { %s1005_s16 = smov %s1007_s19  ;;  %19 = sbr.rel (!%p17_p2) target bundleno = 7 (0x7), region = 91 }
  0xf6   :  { %430 = vsyncpa [#allocation3], 1 }
  0xf7   :  { %432 = vsyncpa [#allocation3 + $0x1], 1 }
  0xf8   :  { %433 = vsyncpa [#allocation6], 1 }
  0xf9   :  { %435 = vsyncpa [#allocation6 + $0x1], 1 }
  0xfa   :  { %436 = vsyncpa [#allocation4], 1 }
  0xfb   :  { %438 = vsyncpa [#allocation4 + $0x1], 1 }

</bundles_post_ra>
